<compile_context>
chip_gen: v5e
topology: v5e:2x2
jax: 0.10.0
libtpu: 0.0.40
codegen_flags: <defaults>
</compile_context>

<pallas_src>
import math

import jax
import jax.numpy as jnp
from jax.experimental import pallas as pl
from jax.experimental.pallas import tpu as pltpu

TWO_PI = 2.0 * math.pi
HALF_PI = 0.5 * math.pi


def _round_up(x, m):
    return ((x + m - 1) // m) * m


def _choose_tile_m(B, dim, out_itemsize):
    """Pick a sublane-aligned batch tile.

    Targets ~2 MiB output blocks (double-buffered: ~4 MiB, far below the scoped
    VMEM limit on every generation), and guarantees >= 2 grid steps when B > 8
    so both TensorCores are used on v7x.
    """
    target_bytes = 2 * 1024 * 1024
    tm = max(1, target_bytes // max(1, dim * out_itemsize))
    if B > 8:
        tm = min(tm, (B + 1) // 2)   # at least 2 grid steps -> both TCs on v7x
    tm = min(tm, B)
    return int(max(8, _round_up(tm, 8)))


def _fourier_embed_kernel(t_ref, w_ref, ph_ref, o_ref):
    # t_ref:  (TM, 1)    per-tile time values
    # w_ref:  (1, dim)   pre-scaled duplicated frequencies  [W, W] * 2*pi
    # ph_ref: (1, dim)   phase row  [0..0, pi/2..pi/2]  (cos(x) == sin(x + pi/2))
    # o_ref:  (TM, dim)  output tile -> single lane-dense store
    res = jnp.sin(t_ref[...] * w_ref[...] + ph_ref[...])
    o_ref[...] = res if res.dtype == o_ref.dtype else res.astype(o_ref.dtype)


def gaussian_fourier_embedding(t, w_scaled, phase, *, out_dtype=jnp.float32):
    """t: (B,) times; w_scaled/phase: (dim,) precomputed rows -> (B, dim)."""
    t = jnp.asarray(t, dtype=jnp.float32)
    B = t.shape[0]
    dim = w_scaled.shape[-1]

    TM = _choose_tile_m(B, dim, jnp.dtype(out_dtype).itemsize)
    grid = (pl.cdiv(B, TM),)          # ragged final block handled by Pallas

    t2 = t.reshape(B, 1)
    w2 = jnp.asarray(w_scaled, jnp.float32).reshape(1, dim)
    ph = jnp.asarray(phase, jnp.float32).reshape(1, dim)

    return pl.pallas_call(
        _fourier_embed_kernel,
        out_shape=jax.ShapeDtypeStruct((B, dim), out_dtype),
        grid=grid,
        in_specs=[
            pl.BlockSpec((TM, 1), lambda i: (i, 0)),     # time tile
            pl.BlockSpec((1, dim), lambda i: (0, 0)),    # scaled freqs (replicated)
            pl.BlockSpec((1, dim), lambda i: (0, 0)),    # phase row   (replicated)
        ],
        out_specs=pl.BlockSpec((TM, dim), lambda i: (i, 0)),
        compiler_params=pltpu.CompilerParams(
            dimension_semantics=("parallel",),
        ),
    )(t2, w2, ph)


class GaussianFourierEmbedding:
    """JAX/Pallas port of the PyTorch GaussianFourierEmbedding module."""

    def __init__(self, dim, key, out_dtype=jnp.float32):
        assert dim % 2 == 0, "Dimension must be even for equal number of sin and cos"
        half = dim // 2
        # torch.randn(dim // 2), requires_grad=False -> fixed Gaussian frequencies.
        self.W = jax.random.normal(key, (half,), dtype=jnp.float32)
        # Fold the 2*pi scale, the sin|cos duplication, and the cos->sin(+pi/2)
        # phase into frozen rows once at init (amortized over all forward calls).
        self.w_scaled = jnp.concatenate([self.W, self.W]) * TWO_PI          # (dim,)
        self.phase = jnp.concatenate(
            [jnp.zeros((half,), jnp.float32), jnp.full((half,), HALF_PI, jnp.float32)]
        )                                                                    # (dim,)
        self.out_dtype = out_dtype

    def __call__(self, t):
        return gaussian_fourier_embedding(
            t, self.w_scaled, self.phase, out_dtype=self.out_dtype
        )


if __name__ == "__main__":
    key = jax.random.PRNGKey(0)
    k_w, k_t = jax.random.split(key)

    B, dim = 2, 32
    t = jax.random.uniform(k_t, (B,), dtype=jnp.float32)

    model = GaussianFourierEmbedding(dim, k_w)
    y = jax.block_until_ready(model(t))
    assert y.shape == (B, dim), y.shape

    # Pure-JAX reference (mirrors the PyTorch forward exactly).
    t_proj = t[:, None] * model.W[None, :] * TWO_PI
    y_ref = jnp.concatenate([jnp.sin(t_proj), jnp.cos(t_proj)], axis=-1)
    assert jnp.allclose(y, y_ref, atol=1e-5, rtol=1e-5), float(
        jnp.max(jnp.abs(y - y_ref))
    )

    # Larger, non-tile-aligned batch to exercise the ragged final block path.
    B2 = 1000
    t2 = jax.random.uniform(jax.random.PRNGKey(1), (B2,), dtype=jnp.float32)
    y2 = jax.block_until_ready(model(t2))
    t2_proj = t2[:, None] * model.W[None, :] * TWO_PI
    y2_ref = jnp.concatenate([jnp.sin(t2_proj), jnp.cos(t2_proj)], axis=-1)
    assert y2.shape == (B2, dim), y2.shape
    assert jnp.allclose(y2, y2_ref, atol=1e-5, rtol=1e-5), float(
        jnp.max(jnp.abs(y2 - y2_ref))
    )

    print("KERNEL_OK")
</pallas_src>

<mosaic_0001>
module attributes {stable_mosaic.version = 11 : i64} {
  func.func @_fourier_embed_kernel(%arg0: i32, %arg1: memref<8x1xf32, #tpu.memory_space<vmem>>, %arg2: memref<1x32xf32, #tpu.memory_space<vmem>>, %arg3: memref<1x32xf32, #tpu.memory_space<vmem>>, %arg4: memref<8x32xf32, #tpu.memory_space<vmem>>) attributes {dimension_semantics = [#tpu.dimension_semantics<parallel>], iteration_bounds = array<i64: 1>, scalar_prefetch = 0 : i64, scratch_operands = 0 : i64, tpu.core_type = #tpu.core_type<tc>, window_params = [{transform_indices = @transform_0, window_bounds = array<i64: 8, 1>}, {pipeline_mode = #tpu.pipeline_mode<synchronous>, transform_indices = @transform_1, window_bounds = array<i64: 1, 32>}, {pipeline_mode = #tpu.pipeline_mode<synchronous>, transform_indices = @transform_2, window_bounds = array<i64: 1, 32>}, {transform_indices = @transform_3, window_bounds = array<i64: 8, 32>}]} {
    %c0 = arith.constant 0 : index
    %c0_0 = arith.constant 0 : index
    %0 = vector.load %arg1[%c0, %c0_0] : memref<8x1xf32, #tpu.memory_space<vmem>>, vector<8x1xf32>
    %c0_1 = arith.constant 0 : index
    %c0_2 = arith.constant 0 : index
    %1 = vector.load %arg2[%c0_1, %c0_2] : memref<1x32xf32, #tpu.memory_space<vmem>>, vector<1x32xf32>
    %2 = vector.broadcast %0 : vector<8x1xf32> to vector<8x32xf32>
    %3 = vector.broadcast %1 : vector<1x32xf32> to vector<8x32xf32>
    %4 = arith.mulf %2, %3 : vector<8x32xf32>
    %c0_3 = arith.constant 0 : index
    %c0_4 = arith.constant 0 : index
    %5 = vector.load %arg3[%c0_3, %c0_4] : memref<1x32xf32, #tpu.memory_space<vmem>>, vector<1x32xf32>
    %6 = vector.broadcast %5 : vector<1x32xf32> to vector<8x32xf32>
    %7 = arith.addf %4, %6 : vector<8x32xf32>
    %8 = math.sin %7 : vector<8x32xf32>
    %c0_5 = arith.constant 0 : index
    %c0_6 = arith.constant 0 : index
    %9 = vector.load %arg4[%c0_5, %c0_6] : memref<8x32xf32, #tpu.memory_space<vmem>>, vector<8x32xf32>
    tpu.vector_store %arg4[%c0_5, %c0_6], %8 {strides = array<i32>} : memref<8x32xf32, #tpu.memory_space<vmem>>, vector<8x32xf32>,
    return
  }
  func.func @transform_0(%arg0: i32) -> (i32, i32) {
    %c0_i32 = arith.constant 0 : i32
    %c0_i32_0 = arith.constant 0 : i32
    return %arg0, %c0_i32 : i32, i32
  }
  func.func @transform_1(%arg0: i32) -> (i32, i32) {
    %c0_i32 = arith.constant 0 : i32
    %c0_i32_0 = arith.constant 0 : i32
    %c0_i32_1 = arith.constant 0 : i32
    return %c0_i32, %c0_i32_0 : i32, i32
  }
  func.func @transform_2(%arg0: i32) -> (i32, i32) {
    %c0_i32 = arith.constant 0 : i32
    %c0_i32_0 = arith.constant 0 : i32
    %c0_i32_1 = arith.constant 0 : i32
    return %c0_i32, %c0_i32_0 : i32, i32
  }
  func.func @transform_3(%arg0: i32) -> (i32, i32) {
    %c0_i32 = arith.constant 0 : i32
    %c0_i32_0 = arith.constant 0 : i32
    return %arg0, %c0_i32 : i32, i32
  }
}

</mosaic_0001>

<bundles_post_ra>
// kernel: tpu_custom_call.1
= control target key start
LH: loop header
LB: loop body
LE: loop exit
PB: predicated region body
PF: predicated region fallthrough
CT: control target
= control target key end

     0   :  { %v248_v1 = vmov 0   ;;  %s351_s0 = inlined_call_operand.vmem [shape: f32[2,1], index: 0, kind: input, shape index: {}]   ;;  %s352_s1 = inlined_call_operand.vmem [shape: f32[1,32], index: 1, kind: input, shape index: {}]   ;;  %s353_s2 = inlined_call_operand.vmem [shape: f32[1,32], index: 2, kind: input, shape index: {}]   ;;  %s354_s3 = inlined_call_operand.hbm [shape: f32[2,32], index: 3, kind: output, shape index: {}]  }
   0x1   :  { %v15_v0 = vld [vmem:[%s351_s0] sm:$0xff]  ;;  %219 = vset.pattern.permute.xlu0 %v248_v1 }
   0x2   :  { %19 = vperm.xlu0 %219, %v15_v0  }
   0x3   :  { %8 = vsyncpa [#allocation3], 0  ;;  %v220_v2 = vld [vmem:[%s352_s1] ss:$0 sm:$0xff]  ;;  %v249_v18 = vmov 683565275  }
   0x4   :  { %v221_v3 = vld [vmem:[%s353_s2] ss:$0 sm:$0xff]  ;;  %v250_v20 = vmov 2475754826   ;;  %v251_v23 = vmov 2131351028  }
   0x5   :  { %v252_v26 = vmov 2102212464   ;;  %v253_v29 = vmov 920167782   ;;  %v254_v32 = vmov 1326507024  }
  0x74   :  { %v20_v4 = vpop.permute.xlu0 %19 }
  0x75   :  { %v25_v5 = vmul.f32 %v220_v2, %v20_v4 }
  0x77   :  { %v288_v6 = vadd.f32 %v221_v3, %v25_v5 }
  0x79   :  { %v34_v7 = vand.u32 2139095040, %v288_v6  ;;  %v31_v10 = vand.u32 2147483647, %v288_v6  ;;  %vm33_vm12 = vcmp.lt.s32.totalorder %v288_v6, 0 }
  0x7b   :  { %v35_v8 = vshrl.u32 %v34_v7, 23  ;;  %v38_v12 = vand.u32 8388607, %v31_v10  ;;  %vm32_vm13 = vcmp.le.f32.partialorder %v31_v10, 0.7853982 }
  0x7d   :  { %v206_v9 = vadd.s32 4294967169, %v35_v8  ;;  %v39_v16 = vor.u32 8388608, %v38_v12 }
  0x7f   :  { %v41_v11 = vadd.s32 1, %v206_v9  ;;  %v305_v39 = vshll.u32 %v39_v16, 8 }
  0x81   :  { %vm42_vm0 = vcmp.gt.s32.totalorder %v41_v11, 0  ;;  %v80_v48 = vand.u32 65535, %v305_v39  ;;  %v81_v49 = vshrl.u32 %v305_v39, 16 }
  0x82   :  { %v43_v13 = vsel %vm42_vm0, %v41_v11, 0  ;;  %vm186_vm0 = vcmask 261120  }
  0x83   :  { %v45_v14 = vand.u32 31, %v43_v13  ;;  %v296_v17 = vshrl.u32 %v43_v13, 5 }
  0x85   :  { %v294_v15 = vsub.s32 32, %v45_v14  ;;  %v48_v19 = vshll.u32 %v249_v18, %v45_v14  ;;  %v51_v21 = vshll.u32 %v250_v20, %v45_v14  ;;  %v54_v25 = vshll.u32 %v251_v23, %v45_v14 }
  0x86   :  { %v57_v28 = vshll.u32 %v252_v26, %v45_v14  ;;  %v60_v31 = vshll.u32 %v253_v29, %v45_v14  ;;  %vm63_vm1 = vcmp.lt.s32.totalorder %v296_v17, 1  ;;  %vm66_vm2 = vcmp.lt.s32.totalorder %v296_v17, 4 }
  0x87   :  { %v49_v22 = vshrl.u32 %v250_v20, %v294_v15  ;;  %v52_v24 = vshrl.u32 %v251_v23, %v294_v15  ;;  %v55_v27 = vshrl.u32 %v252_v26, %v294_v15  ;;  %v58_v30 = vshrl.u32 %v253_v29, %v294_v15 }
  0x88   :  { %v61_v33 = vshrl.u32 %v254_v32, %v294_v15  ;;  %vm65_vm3 = vcmp.lt.s32.totalorder %v296_v17, 3  ;;  %vm64_vm4 = vcmp.lt.s32.totalorder %v296_v17, 2  ;;  %v47_v13 = vshrl.u32 %v249_v18, %v294_v15 }
  0x89   :  { %v50_v34 = vor.u32 %v49_v22, %v48_v19  ;;  %v53_v35 = vor.u32 %v52_v24, %v51_v21  ;;  %v56_v36 = vor.u32 %v55_v27, %v54_v25  ;;  %v59_v37 = vor.u32 %v58_v30, %v57_v28 }
  0x8a   :  { %v62_v38 = vor.u32 %v61_v33, %v60_v31 }
  0x8b   :  { %v71_v40 = vsel %vm63_vm1, %v50_v34, %v53_v35  ;;  %v75_v41 = vsel %vm63_vm1, %v53_v35, %v56_v36  ;;  %v72_v42 = vsel %vm66_vm2, %v59_v37, 920167782  ;;  %v68_v9 = vsel %vm66_vm2, %v56_v36, 2102212464 }
  0x8c   :  { %v76_v43 = vsel %vm66_vm2, %v62_v38, 1326507024  ;;  %v73_v44 = vsel %vm65_vm3, %v56_v36, %v72_v42  ;;  %v67_v22 = vsel %vm63_vm1, %v47_v13, %v50_v34  ;;  %v69_v23 = vsel %vm65_vm3, %v53_v35, %v68_v9 }
  0x8d   :  { %v77_v45 = vsel %vm65_vm3, %v59_v37, %v76_v43  ;;  %v74_v46 = vsel %vm64_vm4, %v71_v40, %v73_v44  ;;  %v70_v15 = vsel %vm64_vm4, %v67_v22, %v69_v23  ;;  %vm174_vm2 = vweird.f32 %v288_v6 }
  0x8e   :  { %v78_v47 = vsel %vm64_vm4, %v75_v41, %v77_v45  ;;  %v104_v52 = vand.u32 65535, %v74_v46  ;;  %v105_v53 = vshrl.u32 %v74_v46, 16  ;;  %v124_v30 = vmul.u32 %v305_v39, %v70_v15 }
  0x8f   :  { %v82_v50 = vand.u32 65535, %v78_v47  ;;  %v83_v51 = vshrl.u32 %v78_v47, 16 }
  0x90   :  { %v107_v56 = vmul.u32 %v105_v53, %v80_v48  ;;  %v108_v57 = vmul.u32 %v104_v52, %v81_v49  ;;  %v106_v61 = vmul.u32 %v104_v52, %v80_v48  ;;  %v109_v2 = vmul.u32 %v105_v53, %v81_v49 }
  0x91   :  { %v85_v54 = vmul.u32 %v83_v51, %v80_v48  ;;  %v86_v55 = vmul.u32 %v82_v50, %v81_v49  ;;  %v84_v58 = vmul.u32 %v82_v50, %v80_v48  ;;  %v87_v60 = vmul.u32 %v83_v51, %v81_v49 }
  0x92   :  { %v110_v62 = vshll.u32 %v107_v56, 16  ;;  %v112_v4 = vshll.u32 %v108_v57, 16  ;;  %v111_v20 = vshrl.u32 %v107_v56, 16  ;;  %v113_v26 = vshrl.u32 %v108_v57, 16 }
  0x93   :  { %v88_v59 = vshll.u32 %v85_v54, 16  ;;  %v90_v63 = vshll.u32 %v86_v55, 16  ;;  %v89_v14 = vshrl.u32 %v85_v54, 16  ;;  %v91_v24 = vshrl.u32 %v86_v55, 16 }
  0x94   :  { %vm114_vm6 = vc.u32 %v106_v61, %v110_v62  ;;  %v116_v5 = vadd.s32 %v110_v62, %v106_v61 }
  0x95   :  { %vm92_vm5 = vc.u32 %v84_v58, %v88_v59  ;;  %v94_v0 = vadd.s32 %v88_v59, %v84_v58  ;;  %v115_v8 = vsel %vm114_vm6, 1, %v248_v1 }
  0x96   :  { %v93_v3 = vsel %vm92_vm5, 1, %v248_v1  ;;  %v117_v12 = vadd.s32 %v115_v8, %v109_v2  ;;  %vm118_vm8 = vc.u32 %v116_v5, %v112_v4  ;;  %v120_v29 = vadd.s32 %v116_v5, %v112_v4 }
  0x97   :  { %v95_v7 = vadd.s32 %v93_v3, %v87_v60  ;;  %vm96_vm7 = vc.u32 %v94_v0, %v90_v63  ;;  %v119_v19 = vsel %vm118_vm8, 1, %v248_v1 }
  0x98   :  { %v97_v11 = vsel %vm96_vm7, 1, %v248_v1  ;;  %v121_v21 = vadd.s32 %v119_v19, %v117_v12 }
  0x99   :  { %v99_v16 = vadd.s32 %v97_v11, %v95_v7 }
  0x9a   :  { %v122_v27 = vadd.s32 %v121_v21, %v111_v20 }
  0x9b   :  { %v100_v25 = vadd.s32 %v99_v16, %v89_v14 }
  0x9c   :  { %v123_v18 = vadd.s32 %v122_v27, %v113_v26 }
  0x9d   :  { %v101_v28 = vadd.s32 %v100_v25, %v91_v24 }
  0x9e   :  { %v127_v1 = vadd.s32 1, %v123_v18 }
  0x9f   :  { %vm126_vm9 = vc.u32 %v101_v28, %v120_v29  ;;  %v125_v17 = vadd.s32 %v120_v29, %v101_v28 }
  0xa0   :  { %v128_v31 = vsel %vm126_vm9, %v127_v1, %v123_v18 }
  0xa1   :  { %v129_v32 = vadd.s32 %v128_v31, %v124_v30 }
  0xa3   :  { %v130_v33 = vadd.s32 536870912, %v129_v32 }
  0xa5   :  { %v131_v34 = vshrl.u32 %v130_v33, 30 }
  0xa7   :  { %v132_v36 = vshll.u32 %v131_v34, 30  ;;  %v155_v55 = vsub.s32 4, %v131_v34 }
  0xa9   :  { %v133_v35 = vsub.s32 %v129_v32, %v132_v36  ;;  %v156_v60 = vsel %vm33_vm12, %v155_v55, %v131_v34 }
  0xaa   :  { %v158_v63 = vsel %vm32_vm13, 0, %v156_v60 }
  0xab   :  { %vm134_vm10 = vcmp.lt.s32.totalorder %v133_v35, 0  ;;  %v135_v37 = vsub.s32 0, %v133_v35  ;;  %v175_v5 = vadd.s32 3, %v158_v63 }
  0xad   :  { %v136_v38 = vsel %vm134_vm10, %v135_v37, %v133_v35  ;;  %v176_v11 = vand.u32 3, %v175_v5 }
  0xae   :  { %v137_v40 = vclz %v136_v38 }
  0xaf   :  { %vm178_vm14 = vcmp.eq.s32.totalorder %v176_v11, 0  ;;  %vm181_vm15 = vcmp.eq.s32.totalorder %v176_v11, 2  ;;  %vm177_vm1 = vcmp.lt.s32.totalorder %v176_v11, 2 }
  0xb0   :  { %v207_v41 = vadd.s32 4294967294, %v137_v40 }
  0xb2   :  { %vm208_vm11 = vcmp.lt.s32.totalorder %v207_v41, 0 }
  0xb3   :  { %v140_v42 = vsel %vm208_vm11, 0, %v207_v41 }
  0xb4   :  { %v141_v43 = vsub.s32 32, %v140_v42  ;;  %v145_v44 = vsub.s32 4294967266, %v140_v42  ;;  %v142_v45 = vshll.u32 %v133_v35, %v140_v42 }
  0xb6   :  { %v143_v46 = vshrl.u32 %v125_v17, %v141_v43  ;;  %v146_v47 = vadd.s32 127, %v145_v44 }
  0xb8   :  { %v144_v39 = vor.u32 %v143_v46, %v142_v45  ;;  %v147_v48 = vshll.u32 %v146_v47, 23 }
  0xba   :  { %v148_v49 = vor.u32 4788187, %v147_v48  ;;  %v151_v51 = vcvt.s32.f32 %v144_v39 }
  0xbc   :  { %v149_v50 = vand.u32 2147483647, %v148_v49 }
  0xbe   :  { %v152_v52 = vmul.f32 %v151_v51, %v149_v50 }
  0xc0   :  { %v153_v53 = vxor.u32 2147483648, %v152_v52 }
  0xc2   :  { %v154_v54 = vsel %vm33_vm12, %v153_v53, %v152_v52 }
  0xc3   :  { %v157_v56 = vsel %vm32_vm13, %v288_v6, %v154_v54 }
  0xc4   :  { %v159_v57 = vmul.f32 %v157_v56, %v157_v56 }
  0xc6   :  { %v160_v58 = vmul.f32 -0.001358992, %v159_v57  ;;  %v167_v59 = vmul.f32 -0.00019511016, %v159_v57 }
  0xc8   :  { %v161_v61 = vadd.f32 0.041655596, %v160_v58  ;;  %v168_v62 = vadd.f32 0.008332121, %v167_v59 }
  0xca   :  { %v162_v0 = vmul.f32 %v161_v61, %v159_v57  ;;  %v169_v2 = vmul.f32 %v168_v62, %v159_v57 }
  0xcc   :  { %v163_v3 = vadd.f32 -0.4999988, %v162_v0  ;;  %v170_v4 = vadd.f32 -0.16666654, %v169_v2 }
  0xce   :  { %v164_v7 = vmul.f32 %v163_v3, %v159_v57  ;;  %v171_v8 = vmul.f32 %v170_v4, %v159_v57 }
  0xd0   :  { %v165_v9 = vadd.f32 1.0, %v164_v7  ;;  %v172_v10 = vadd.f32 1.0, %v171_v8 }
  0xd2   :  { %v173_v12 = vmul.f32 %v172_v10, %v157_v56  ;;  %v182_v13 = vxor.u32 2147483648, %v165_v9 }
  0xd4   :  { %v179_v14 = vxor.u32 2147483648, %v173_v12  ;;  %v183_v19 = vsel %vm181_vm15, %v182_v13, %v173_v12 }
  0xd6   :  { %v180_v16 = vsel %vm178_vm14, %v165_v9, %v179_v14 }
  0xd7   :  { %v184_v20 = vsel %vm177_vm1, %v180_v16, %v183_v19 }
  0xd8   :  { %v185_v21 = vsel %vm174_vm2, nan, %v184_v20 }
  0xd9   :  { %187 = vst.msk [vmem:[#allocation2] sm:$0xff] %vm186_vm0, %v185_v21 }
  0xda   :  { %191 = vsyncadd [#allocation3], 96  ;;  %s194_s2 = sshll.u32 %s354_s3, 4  ;;  %s255_s18 = smov [#allocation2]   ;;  %s195_s2 = int_to_ptr.hbm [resolvable:$true] %s194_s2 }
  0xdb   :  { %s192_s19 = sshll.u32 %s255_s18, 4  ;;  %s256_s20 = smov 32   ;;  %s193_s19 = int_to_ptr.vmem [resolvable:$true] %s192_s19 }
  0xdc   :  { %s257_s21 = smov 2  }
  0xdd   :  { %200 = dma.vmem_to_hbm [thread:$0]  %s193_s19, 32, %s195_s2, [#allocation3], %s256_s20, %s256_s20, %s257_s21  }
  0xde   :  { %246 = dma.done.wait [#allocation3], 128  }
  0xdf   :  { %247 = vsyncadd [#allocation3], 4294967168 }
  0xe0   :  { %205 = vsyncpa [#allocation3], 1 }

</bundles_post_ra>
